<compile_context>
chip_gen: v6e
topology: v6e:2x2x1
jax: 0.10.0
libtpu: 0.0.40
codegen_flags: <defaults>
</compile_context>

<pallas_src>
import jax
import jax.numpy as jnp
from jax.experimental import pallas as pl
from jax.experimental.pallas import tpu as pltpu


def _round_up(a, b):
    return ((a + b - 1) // b) * b


def _im2col_T(x_nchw, K, stride, pad):
    """im2col in transposed (lane-dense) layout.

    Returns (patches_T, Ho, Wo) with patches_T of shape (K*K*Cin, N*Ho*Wo).
    Row index = (kh*K + kw)*Cin + cin, column index = (n*Ho + ho)*Wo + wo,
    matching w.reshape(K*K*Cin, Cout)."""
    N, C, H, W = x_nchw.shape
    xp = jnp.pad(x_nchw, ((0, 0), (0, 0), (pad, pad), (pad, pad))) if pad > 0 else x_nchw
    Hp, Wp = H + 2 * pad, W + 2 * pad
    Ho = (Hp - K) // stride + 1
    Wo = (Wp - K) // stride + 1
    taps = []
    for kh in range(K):
        for kw in range(K):
            taps.append(xp[:, :,
                           kh:kh + stride * (Ho - 1) + 1:stride,
                           kw:kw + stride * (Wo - 1) + 1:stride])   # (N, C, Ho, Wo)
    t = jnp.stack(taps, axis=0)                 # (K*K, N, C, Ho, Wo)
    t = jnp.transpose(t, (0, 2, 1, 3, 4))       # (K*K, C, N, Ho, Wo)
    return t.reshape(K * K * C, N * Ho * Wo), Ho, Wo


def _make_kernel(inv_count, eps):
    """Two-phase fused conv+BN+ReLU kernel over grid = (phase, spatial_tile)."""

    def kernel(pT_ref, wT_ref, g_ref, beta_ref, o_ref, sum_ref, sumsq_ref):
        # pT_ref:   (KKC_p, TM)    im2col patches (spatial positions on lanes)
        # wT_ref:   (Cout_p, KKC_p) conv weight, resident across the whole grid
        # g_ref:    (Cout_p, 1)    BN gamma
        # beta_ref: (Cout_p, 1)    BN beta
        # o_ref:    (Cout_p, TM)   lane-dense output tile
        # sum/sumsq_ref: (Cout_p, 1) f32 scratch, persist across grid steps
        phase = pl.program_id(0)   # 0: accumulate batch stats, 1: normalize + store
        tile = pl.program_id(1)

        @pl.when((phase == 0) & (tile == 0))
        def _init():
            sum_ref[...] = jnp.zeros_like(sum_ref)
            sumsq_ref[...] = jnp.zeros_like(sumsq_ref)

        # Single MXU matmul per (phase, tile): conv bias is omitted (cancelled by BN).
        y = jnp.dot(wT_ref[...], pT_ref[...],
                    preferred_element_type=jnp.float32)     # (Cout_p, TM), f32

        @pl.when(phase == 0)
        def _accumulate():
            sum_ref[...] = sum_ref[...] + jnp.sum(y, axis=1, keepdims=True)
            sumsq_ref[...] = sumsq_ref[...] + jnp.sum(y * y, axis=1, keepdims=True)

        @pl.when(phase == 1)
        def _normalize_store():
            mean = sum_ref[...] * inv_count                   # (Cout_p, 1)
            var = sumsq_ref[...] * inv_count - mean * mean    # biased variance
            inv_std = jax.lax.rsqrt(var + eps)
            scale = g_ref[...] * inv_std
            shift = beta_ref[...] - mean * scale
            o_ref[...] = jnp.maximum(y * scale + shift, 0.0).astype(o_ref.dtype)

    return kernel


def conv_norm_act(x_nchw, w_hwio, gamma, beta, *, stride=1, eps=1e-5):
    """Fused Conv2d(kernel K, stride, padding=(K-1)//2, bias folded away) +
    BatchNorm2d(training batch statistics) + ReLU.  NCHW in, NCHW out."""
    K = w_hwio.shape[0]
    Cin = w_hwio.shape[2]
    Cout = w_hwio.shape[3]
    assert x_nchw.shape[1] == Cin
    pad = (K - 1) // 2

    pT, Ho, Wo = _im2col_T(x_nchw.astype(jnp.float32), K, stride, pad)   # (KKC, M)
    KKC, M = pT.shape
    N = x_nchw.shape[0]

    # Zero-pad sublane dims to multiples of 8 -> clean (8,128) tiles, no masked sublanes.
    KKC_p = _round_up(KKC, 8)
    Cout_p = _round_up(Cout, 8)

    wT = w_hwio.reshape(KKC, Cout).T.astype(jnp.float32)                 # (Cout, KKC)
    if KKC_p != KKC:
        pT = jnp.pad(pT, ((0, KKC_p - KKC), (0, 0)))
        wT = jnp.pad(wT, ((0, 0), (0, KKC_p - KKC)))
    if Cout_p != Cout:
        wT = jnp.pad(wT, ((0, Cout_p - Cout), (0, 0)))
    g2 = jnp.pad(gamma.astype(jnp.float32), (0, Cout_p - Cout)).reshape(Cout_p, 1)
    b2 = jnp.pad(beta.astype(jnp.float32), (0, Cout_p - Cout)).reshape(Cout_p, 1)

    # Adaptive lane tile: as large as the VMEM budget allows (double-buffered patch +
    # output tiles, resident weights), capped at 2048 lanes, floor 128.
    w_bytes = Cout_p * KKC_p * 4
    budget = max(4 * 1024 * 1024, 22 * 1024 * 1024 - 2 * w_bytes)
    bytes_per_lane = 4 * (KKC_p + Cout_p)
    tm_cap = max(128, (budget // (2 * bytes_per_lane)) // 128 * 128)
    tm = int(min(_round_up(M, 128), 2048, tm_cap))

    M_pad = _round_up(M, tm)
    if M_pad != M:
        # zero patch columns -> zero conv outputs -> contribute nothing to sum/sumsq;
        # the divisor uses the true M, and padded columns are sliced off afterwards.
        pT = jnp.pad(pT, ((0, 0), (0, M_pad - M)))
    num_tiles = M_pad // tm

    kernel = _make_kernel(float(1.0 / M), float(eps))

    out = pl.pallas_call(
        kernel,
        out_shape=jax.ShapeDtypeStruct((Cout_p, M_pad), jnp.float32),
        grid_spec=pltpu.PrefetchScalarGridSpec(
            num_scalar_prefetch=0,
            grid=(2, num_tiles),                        # (phase, spatial tile)
            in_specs=[
                pl.BlockSpec((KKC_p, tm), lambda p, t: (0, t)),     # patch tile (lane-dense)
                pl.BlockSpec((Cout_p, KKC_p), lambda p, t: (0, 0)),  # weights, resident
                pl.BlockSpec((Cout_p, 1), lambda p, t: (0, 0)),      # gamma
                pl.BlockSpec((Cout_p, 1), lambda p, t: (0, 0)),      # beta
            ],
            # Phase 0 never writes the output: mapping all phase-0 steps to block (0, 0)
            # keeps the output block resident (no garbage write-backs); phase 1 streams
            # lane-dense tiles (0, t) out normally.
            out_specs=pl.BlockSpec((Cout_p, tm), lambda p, t: (0, p * t)),
            scratch_shapes=[pltpu.VMEM((Cout_p, 1), jnp.float32),   # per-channel sum
                            pltpu.VMEM((Cout_p, 1), jnp.float32)],  # per-channel sum of squares
        ),
        compiler_params=pltpu.CompilerParams(
            # Both axes are part of the BN reduction dependency -> "arbitrary".
            dimension_semantics=("arbitrary", "arbitrary"),
            vmem_limit_bytes=32 * 1024 * 1024,
        ),
    )(pT, wT, g2, b2)

    out = out[:Cout, :M].reshape(Cout, N, Ho, Wo)
    return jnp.transpose(out, (1, 0, 2, 3))            # back to NCHW


def reference_conv_norm_act(x_nchw, w_hwio, bias, gamma, beta, *, stride=1, eps=1e-5):
    """Pure-JAX reference matching the PyTorch module (conv bias included to show it
    is exactly cancelled by the batch-stat BN)."""
    K = w_hwio.shape[0]
    pad = (K - 1) // 2
    y = jax.lax.conv_general_dilated(
        x_nchw, w_hwio, window_strides=(stride, stride),
        padding=[(pad, pad), (pad, pad)],
        dimension_numbers=("NCHW", "HWIO", "NCHW"))
    y = y + bias.reshape(1, -1, 1, 1)
    mean = jnp.mean(y, axis=(0, 2, 3), keepdims=True)
    var = jnp.mean((y - mean) ** 2, axis=(0, 2, 3), keepdims=True)   # biased
    y = (y - mean) * jax.lax.rsqrt(var + eps)
    y = y * gamma.reshape(1, -1, 1, 1) + beta.reshape(1, -1, 1, 1)
    return jnp.maximum(y, 0.0)


if __name__ == "__main__":
    key = jax.random.PRNGKey(0)
    kx, kw, kb, kg, kbe, kw2, kb2 = jax.random.split(key, 7)

    N, Cin, H, W = 2, 4, 16, 16
    Cout = 8
    x = jax.random.normal(kx, (N, Cin, H, W), jnp.float32)            # NCHW

    # ConvNormAct(in_channels=4, out_channels=8, kernel_size=3, stride=1,
    #             norm=BatchNorm2d, act=ReLU)
    K = 3
    w = 0.1 * jax.random.normal(kw, (K, K, Cin, Cout), jnp.float32)   # HWIO
    b = 0.1 * jax.random.normal(kb, (Cout,), jnp.float32)             # conv bias (cancelled by BN)
    gamma = 1.0 + 0.1 * jax.random.normal(kg, (Cout,), jnp.float32)
    beta = 0.1 * jax.random.normal(kbe, (Cout,), jnp.float32)

    out = conv_norm_act(x, w, gamma, beta, stride=1)
    jax.block_until_ready(out)
    assert out.shape == (N, Cout, H, W)
    ref = reference_conv_norm_act(x, w, b, gamma, beta, stride=1)
    err = float(jnp.max(jnp.abs(out - ref)))
    assert err < 5e-2, f"3x3/s1 ConvNormAct mismatch: max abs err = {err}"

    # ConvNormAct default config (kernel_size=1) with stride=2 (DownBlock-style use).
    w1 = 0.1 * jax.random.normal(kw2, (1, 1, Cout, Cout), jnp.float32)
    b1 = 0.1 * jax.random.normal(kb2, (Cout,), jnp.float32)
    g1 = jnp.ones((Cout,), jnp.float32)
    be1 = jnp.zeros((Cout,), jnp.float32)

    out2 = conv_norm_act(out, w1, g1, be1, stride=2)
    jax.block_until_ready(out2)
    assert out2.shape == (N, Cout, H // 2, W // 2)
    ref2 = reference_conv_norm_act(out, w1, b1, g1, be1, stride=2)
    err2 = float(jnp.max(jnp.abs(out2 - ref2)))
    assert err2 < 5e-2, f"1x1/s2 ConvNormAct mismatch: max abs err = {err2}"

    print("KERNEL_OK")
</pallas_src>

<mosaic_0001>
module attributes {stable_mosaic.version = 11 : i64} {
  func.func @kernel(%arg0: i32, %arg1: i32, %arg2: memref<40x512xf32, #tpu.memory_space<vmem>>, %arg3: memref<8x40xf32, #tpu.memory_space<vmem>>, %arg4: memref<8x1xf32, #tpu.memory_space<vmem>>, %arg5: memref<8x1xf32, #tpu.memory_space<vmem>>, %arg6: memref<8x512xf32, #tpu.memory_space<vmem>>, %arg7: memref<8x1xf32, #tpu.memory_space<vmem>>, %arg8: memref<8x1xf32, #tpu.memory_space<vmem>>) attributes {dimension_semantics = [#tpu.dimension_semantics<arbitrary>, #tpu.dimension_semantics<arbitrary>], iteration_bounds = array<i64: 2, 1>, scalar_prefetch = 0 : i64, scratch_operands = 2 : i64, tpu.core_type = #tpu.core_type<tc>, window_params = [{transform_indices = @transform_0, window_bounds = array<i64: 40, 512>}, {pipeline_mode = #tpu.pipeline_mode<synchronous>, transform_indices = @transform_1, window_bounds = array<i64: 8, 40>}, {pipeline_mode = #tpu.pipeline_mode<synchronous>, transform_indices = @transform_2, window_bounds = array<i64: 8, 1>}, {pipeline_mode = #tpu.pipeline_mode<synchronous>, transform_indices = @transform_3, window_bounds = array<i64: 8, 1>}, {transform_indices = @transform_4, window_bounds = array<i64: 8, 512>}]} {
    %c0_i32 = arith.constant 0 : i32
    %0 = arith.cmpi eq, %arg0, %c0_i32 : i32
    %c0_i32_0 = arith.constant 0 : i32
    %1 = arith.cmpi eq, %arg1, %c0_i32_0 : i32
    %2 = arith.andi %0, %1 : i1
    %3 = arith.extui %2 : i1 to i32
    %c0_i32_1 = arith.constant 0 : i32
    %4 = arith.cmpi ne, %3, %c0_i32_1 : i32
    scf.if %4 {
      %cst_8 = arith.constant 0.000000e+00 : f32
      %14 = vector.broadcast %cst_8 : f32 to vector<8x1xf32>
      %c0_9 = arith.constant 0 : index
      %c0_10 = arith.constant 0 : index
      %15 = vector.load %arg7[%c0_9, %c0_10] : memref<8x1xf32, #tpu.memory_space<vmem>>, vector<8x1xf32>
      tpu.vector_store %arg7[%c0_9, %c0_10], %14 {strides = array<i32>} : memref<8x1xf32, #tpu.memory_space<vmem>>, vector<8x1xf32>,
      %cst_11 = arith.constant 0.000000e+00 : f32
      %16 = vector.broadcast %cst_11 : f32 to vector<8x1xf32>
      %c0_12 = arith.constant 0 : index
      %c0_13 = arith.constant 0 : index
      %17 = vector.load %arg8[%c0_12, %c0_13] : memref<8x1xf32, #tpu.memory_space<vmem>>, vector<8x1xf32>
      tpu.vector_store %arg8[%c0_12, %c0_13], %16 {strides = array<i32>} : memref<8x1xf32, #tpu.memory_space<vmem>>, vector<8x1xf32>,
    } else {
    }
    %c0 = arith.constant 0 : index
    %c0_2 = arith.constant 0 : index
    %5 = vector.load %arg3[%c0, %c0_2] : memref<8x40xf32, #tpu.memory_space<vmem>>, vector<8x40xf32>
    %c0_3 = arith.constant 0 : index
    %c0_4 = arith.constant 0 : index
    %6 = vector.load %arg2[%c0_3, %c0_4] : memref<40x512xf32, #tpu.memory_space<vmem>>, vector<40x512xf32>
    %cst = arith.constant dense<0.000000e+00> : vector<8x512xf32>
    %7 = tpu.matmul %5, %6, %cst {dimension_numbers = #tpu.dot_dimension_numbers<[1], [0], [0], [1], [0, 0, 1, 1], [], []>} : vector<8x40xf32>, vector<40x512xf32>, vector<8x512xf32> -> vector<8x512xf32>
    %c0_i32_5 = arith.constant 0 : i32
    %8 = arith.cmpi eq, %arg0, %c0_i32_5 : i32
    %9 = arith.extui %8 : i1 to i32
    %c0_i32_6 = arith.constant 0 : i32
    %10 = arith.cmpi ne, %9, %c0_i32_6 : i32
    scf.if %10 {
      %c0_8 = arith.constant 0 : index
      %c0_9 = arith.constant 0 : index
      %14 = vector.load %arg7[%c0_8, %c0_9] : memref<8x1xf32, #tpu.memory_space<vmem>>, vector<8x1xf32>
      %cst_10 = arith.constant dense<0.000000e+00> : vector<8xf32>
      %15 = vector.multi_reduction <add>, %7, %cst_10 [1] : vector<8x512xf32> to vector<8xf32>
      %16 = vector.shape_cast %15 : vector<8xf32> to vector<8x1xf32>
      %17 = arith.addf %14, %16 : vector<8x1xf32>
      %c0_11 = arith.constant 0 : index
      %c0_12 = arith.constant 0 : index
      %18 = vector.load %arg7[%c0_11, %c0_12] : memref<8x1xf32, #tpu.memory_space<vmem>>, vector<8x1xf32>
      tpu.vector_store %arg7[%c0_11, %c0_12], %17 {strides = array<i32>} : memref<8x1xf32, #tpu.memory_space<vmem>>, vector<8x1xf32>,
      %c0_13 = arith.constant 0 : index
      %c0_14 = arith.constant 0 : index
      %19 = vector.load %arg8[%c0_13, %c0_14] : memref<8x1xf32, #tpu.memory_space<vmem>>, vector<8x1xf32>
      %20 = arith.mulf %7, %7 : vector<8x512xf32>
      %cst_15 = arith.constant dense<0.000000e+00> : vector<8xf32>
      %21 = vector.multi_reduction <add>, %20, %cst_15 [1] : vector<8x512xf32> to vector<8xf32>
      %22 = vector.shape_cast %21 : vector<8xf32> to vector<8x1xf32>
      %23 = arith.addf %19, %22 : vector<8x1xf32>
      %c0_16 = arith.constant 0 : index
      %c0_17 = arith.constant 0 : index
      %24 = vector.load %arg8[%c0_16, %c0_17] : memref<8x1xf32, #tpu.memory_space<vmem>>, vector<8x1xf32>
      tpu.vector_store %arg8[%c0_16, %c0_17], %23 {strides = array<i32>} : memref<8x1xf32, #tpu.memory_space<vmem>>, vector<8x1xf32>,
    } else {
    }
    %c1_i32 = arith.constant 1 : i32
    %11 = arith.cmpi eq, %arg0, %c1_i32 : i32
    %12 = arith.extui %11 : i1 to i32
    %c0_i32_7 = arith.constant 0 : i32
    %13 = arith.cmpi ne, %12, %c0_i32_7 : i32
    scf.if %13 {
      %c0_8 = arith.constant 0 : index
      %c0_9 = arith.constant 0 : index
      %14 = vector.load %arg7[%c0_8, %c0_9] : memref<8x1xf32, #tpu.memory_space<vmem>>, vector<8x1xf32>
      %cst_10 = arith.constant 0.001953125 : f32
      %15 = vector.broadcast %cst_10 : f32 to vector<8x1xf32>
      %16 = arith.mulf %14, %15 : vector<8x1xf32>
      %c0_11 = arith.constant 0 : index
      %c0_12 = arith.constant 0 : index
      %17 = vector.load %arg8[%c0_11, %c0_12] : memref<8x1xf32, #tpu.memory_space<vmem>>, vector<8x1xf32>
      %cst_13 = arith.constant 0.001953125 : f32
      %18 = vector.broadcast %cst_13 : f32 to vector<8x1xf32>
      %19 = arith.mulf %17, %18 : vector<8x1xf32>
      %20 = arith.mulf %16, %16 : vector<8x1xf32>
      %21 = arith.subf %19, %20 : vector<8x1xf32>
      %cst_14 = arith.constant 9.99999974E-6 : f32
      %22 = vector.broadcast %cst_14 : f32 to vector<8x1xf32>
      %23 = arith.addf %21, %22 : vector<8x1xf32>
      %24 = math.rsqrt %23 : vector<8x1xf32>
      %c0_15 = arith.constant 0 : index
      %c0_16 = arith.constant 0 : index
      %25 = vector.load %arg4[%c0_15, %c0_16] : memref<8x1xf32, #tpu.memory_space<vmem>>, vector<8x1xf32>
      %26 = arith.mulf %25, %24 : vector<8x1xf32>
      %c0_17 = arith.constant 0 : index
      %c0_18 = arith.constant 0 : index
      %27 = vector.load %arg5[%c0_17, %c0_18] : memref<8x1xf32, #tpu.memory_space<vmem>>, vector<8x1xf32>
      %28 = arith.mulf %16, %26 : vector<8x1xf32>
      %29 = arith.subf %27, %28 : vector<8x1xf32>
      %30 = vector.broadcast %26 : vector<8x1xf32> to vector<8x512xf32>
      %31 = arith.mulf %7, %30 : vector<8x512xf32>
      %32 = vector.broadcast %29 : vector<8x1xf32> to vector<8x512xf32>
      %33 = arith.addf %31, %32 : vector<8x512xf32>
      %cst_19 = arith.constant 0.000000e+00 : f32
      %34 = vector.broadcast %cst_19 : f32 to vector<8x512xf32>
      %35 = arith.maximumf %33, %34 : vector<8x512xf32>
      %c0_20 = arith.constant 0 : index
      %c0_21 = arith.constant 0 : index
      %36 = vector.load %arg6[%c0_20, %c0_21] : memref<8x512xf32, #tpu.memory_space<vmem>>, vector<8x512xf32>
      tpu.vector_store %arg6[%c0_20, %c0_21], %35 {strides = array<i32>} : memref<8x512xf32, #tpu.memory_space<vmem>>, vector<8x512xf32>,
    } else {
    }
    return
  }
  func.func @transform_0(%arg0: i32, %arg1: i32) -> (i32, i32) {
    %c0_i32 = arith.constant 0 : i32
    %c0_i32_0 = arith.constant 0 : i32
    return %c0_i32, %arg1 : i32, i32
  }
  func.func @transform_1(%arg0: i32, %arg1: i32) -> (i32, i32) {
    %c0_i32 = arith.constant 0 : i32
    %c0_i32_0 = arith.constant 0 : i32
    %c0_i32_1 = arith.constant 0 : i32
    return %c0_i32, %c0_i32_0 : i32, i32
  }
  func.func @transform_2(%arg0: i32, %arg1: i32) -> (i32, i32) {
    %c0_i32 = arith.constant 0 : i32
    %c0_i32_0 = arith.constant 0 : i32
    %c0_i32_1 = arith.constant 0 : i32
    return %c0_i32, %c0_i32_0 : i32, i32
  }
  func.func @transform_3(%arg0: i32, %arg1: i32) -> (i32, i32) {
    %c0_i32 = arith.constant 0 : i32
    %c0_i32_0 = arith.constant 0 : i32
    %c0_i32_1 = arith.constant 0 : i32
    return %c0_i32, %c0_i32_0 : i32, i32
  }
  func.func @transform_4(%arg0: i32, %arg1: i32) -> (i32, i32) {
    %0 = arith.muli %arg0, %arg1 : i32
    %c0_i32 = arith.constant 0 : i32
    %c0_i32_0 = arith.constant 0 : i32
    return %c0_i32, %0 : i32, i32
  }
}

</mosaic_0001>

<bundles_post_ra>
// kernel: tpu_custom_call.1
= control target key start
LH: loop header
LB: loop body
LE: loop exit
PB: predicated region body
PF: predicated region fallthrough
CT: control target
= control target key end

     0   :  { %9 = vsyncpa [#allocation5], 0  ;;  %s811_s0 = inlined_call_operand.hbm [shape: f32[40,512], index: 0, kind: input, shape index: {}]   ;;  %s812_s1 = inlined_call_operand.vmem [shape: f32[8,40], index: 1, kind: input, shape index: {}]   ;;  %s813_s2 = inlined_call_operand.vmem [shape: f32[8,1], index: 2, kind: input, shape index: {}]   ;;  %s814_s3 = inlined_call_operand.vmem [shape: f32[8,1], index: 3, kind: input, shape index: {}]   ;;  %s815_s4 = inlined_call_operand.hbm [shape: f32[8,512], index: 4, kind: output, shape index: {}]  }
   0x1   :  { %10 = vsyncpa [#allocation6], 0 }
   0x2   :  { %12 = vsyncpa [#allocation6 + $0x1], 0  ;;  %s729_s15 = smov 0   ;;  %s731_s16 = smov 0  }
   0x3   :  { %s733_s17 = smov 0  }
   0x4 LB: > { %s544_s18 = sadd.s32 4294967295, %s695_s17   ;;  %s545_s19 = sadd.s32 4294967294, %s695_s17   ;;  %s695_s17 = sphi %s733_s17, %s18_s17   ;;  %s691_s16 = sphi %s731_s16, %s820_s16   ;;  %s687_s15 = sphi %s729_s15, %s819_s15  }
   0x5   : > { %s30_s20 = sadd.s32 1, %s691_s16  ;;  %p546_p0 = scmp.ge.s32.totalorder %s695_s17, 1 }
   0x6   : > { %p32_p1 = scmp.ge.s32.totalorder %s30_s20, 2  ;;  %p152_p2 = scmp.lt.s32.totalorder %s695_s17, 3 }
   0x7   : > { %p751_p3 = scmp.eq.s32.totalorder %s544_s18, 0  ;;  %s697_s23 = smov [#allocation4]  }
   0x8   : > { %s822_s20 = smov (%p32_p1, %s30_s20), 0  ;;  %p757_p4 = pnand %p546_p0, %p152_p2 }
   0x9   : > { %s167_s24 = sshll.u32 %s697_s23, 4  ;;  %s168_s24 = int_to_ptr.vmem [resolvable:$true] %s167_s24 }
   0xa   : > { %p568_p5 = pneg %p757_p4  ;;  %s626_s25 = scalar_lea.vmem %s168_s24, 2560 }
   0xb   : > { %p627_p8 = scmp.ne.s32.totalorder %s168_s24, %s626_s25  ;;  %p634_p11 = scmp.lt.s32.totalorder %s168_s24, %s168_s24 }
   0xc   : > { %p569_p6 = pnand %p751_p3, %p568_p5  ;;  %p635_p12 = scmp.lt.s32.totalorder %s626_s25, %s626_s25 }
   0xe   : > { %p617_p7 = pneg %p569_p6  ;;  %p636_p13 = por %p635_p12, %p634_p11 }
  0x10   : > { %p629_p9 = pnand %p627_p8, %p617_p7 }
  0x12   : > { %p630_p10 = pneg %p629_p9 }
  0x14   : > { %p637_p0 = pnand %p636_p13, %p630_p10 }
  0x16   : > { %640 = shalt.err (!%p637_p0)
}
  0x17   : > { %s698_s26 = smov 512   ;;  %s699_s27 = smov 32  }
  0x18   : > { %571 = dma.hbm_to_vmem [thread:$0]  (!%p569_p6), %s811_s0, 2560, %s168_s24, [#allocation5], %s698_s26, %s698_s26, %s699_s27  }
  0x19   : > { %192 = sbr.rel (%p757_p4) target bundleno = 575 (0x23f), region = 36 }
  0x1e   : > { %678 = dma.done.wait (%p751_p3), [#allocation5], 2560  }
  0x1f   : > { %680 = vsyncadd (%p751_p3), [#allocation5], 4294964736  ;;  %p216_p1 = scmp.eq.s32.totalorder %s687_s15, 0 }
  0x20   : > { %vm222_vm0 = vcmask (%p216_p1), 7168   ;;  %v700_v0 = vmov (%p216_p1), 0.0  }
  0x21   : > { %221 = sbr.rel (!%p216_p1) target bundleno = 38 (0x26), region = 44  ;;  %223 = vst.msk [vmem:[#allocation2] sm:$0xff] (%p216_p1), %vm222_vm0, %v700_v0  ;;  %224 = vst.msk [vmem:[#allocation3] sm:$0xff] (%p216_p1), %vm222_vm0, %v700_v0 }
  0x26 PF: > { %v243_v1 = vld [vmem:[#allocation4 + $0x88] sm:$0xff]  ;;  %v245_v2 = vld [vmem:[#allocation4 + $0x98] sm:$0xff]  ;;  %v242_v3 = vld [vmem:[#allocation4 + $0x80] sm:$0xff]  ;;  %vm246_vm1 = vcmask 326656   ;;  %v701_v22 = vmov 0.0   ;;  %p553_p2 = scmp.ne.s32.totalorder %s687_s15, 0 }
  0x27   : > { %272 = vmatprep.subr.mxu0 %v243_v1  ;;  %343 = vmatprep.subr.mxu1 %v245_v2  ;;  %v244_v4 = vld [vmem:[#allocation4 + $0x90] sm:$0xff]  ;;  %v239_v5 = vld [vmem:[#allocation4 + $0x68] sm:$0xff]  ;;  %v241_v6 = vld [vmem:[#allocation4 + $0x78] sm:$0xff] }
  0x28   : > { %273 = vmatpush1.msra.mxu0 %v242_v3  ;;  %344 = vmatpush1.msra.mxu1 %v244_v4  ;;  %v238_v7 = vld [vmem:[#allocation4 + $0x60] sm:$0xff]  ;;  %v240_v8 = vld [vmem:[#allocation4 + $0x70] sm:$0xff]  ;;  %v235_v9 = vld [vmem:[#allocation4 + $0x48] sm:$0xff] }
  0x29   : > { %274 = vmatprep.subr.mxu0 %v239_v5  ;;  %345 = vmatprep.subr.mxu1 %v241_v6  ;;  %v237_v10 = vld [vmem:[#allocation4 + $0x58] sm:$0xff]  ;;  %v234_v11 = vld [vmem:[#allocation4 + $0x40] sm:$0xff]  ;;  %v236_v12 = vld [vmem:[#allocation4 + $0x50] sm:$0xff] }
  0x2a   : > { %275 = vmatpush1.msra.mxu0 %v238_v7  ;;  %346 = vmatpush1.msra.mxu1 %v240_v8  ;;  %v231_v13 = vld [vmem:[#allocation4 + $0x28] sm:$0xff]  ;;  %v233_v14 = vld [vmem:[#allocation4 + $0x38] sm:$0xff]  ;;  %v230_v15 = vld [vmem:[#allocation4 + $0x20] sm:$0xff] }
  0x2b   : > { %276 = vmatprep.subr.mxu0 %v235_v9  ;;  %347 = vmatprep.subr.mxu1 %v237_v10  ;;  %v232_v16 = vld [vmem:[#allocation4 + $0x30] sm:$0xff]  ;;  %v227_v17 = vld [vmem:[#allocation4 + $0x8] sm:$0xff]  ;;  %v229_v18 = vld [vmem:[#allocation4 + $0x18] sm:$0xff] }
  0x2c   : > { %277 = vmatpush1.msra.mxu0 %v234_v11  ;;  %348 = vmatpush1.msra.mxu1 %v236_v12  ;;  %v226_v19 = vld [vmem:[#allocation4] sm:$0xff]  ;;  %v228_v20 = vld [vmem:[#allocation4 + $0x10] sm:$0xff] }
  0x2d   : > { %278 = vmatprep.subr.mxu0 %v231_v13  ;;  %349 = vmatprep.subr.mxu1 %v233_v14  ;;  %v225_v21 = vld [vmem:[%s812_s1] sm:$0xff] }
  0x2e   : > { %279 = vmatpush1.msra.mxu0 %v230_v15  ;;  %350 = vmatpush1.msra.mxu1 %v232_v16 }
  0x2f   : > { %280 = vmatprep.subr.mxu0 %v227_v17  ;;  %351 = vmatprep.subr.mxu1 %v229_v18 }
  0x30   : > { %281 = vmatpush1.msra.mxu0 %v226_v19  ;;  %314 = vmatprep.mubr.f32.mxu0 %v701_v22 }
  0x31   : > { %352 = vmatpush1.msra.mxu1 %v228_v20  ;;  %385 = vmatprep.mubr.f32.mxu1 %v701_v22 }
  0x32   : > { %551 = vmatmul.mubr.msk.f32.vlgmr.msra.gmra.mxu0 %vm246_vm1, %v225_v21  ;;  %552 = vmatmul.mubr.msk.f32.vlgmr.msra.gmra.mxu1 %vm246_vm1, %v225_v21 }
  0xf0   : > { %394 = sbr.rel (%p553_p2) target bundleno = 396 (0x18c), region = 48 }
  0xf2   : > { %v316_v23 = vpop.f32.mrf.mxu0  ;;  %v387_v24 = vpop.f32.mrf.mxu1 }
  0xf4   : > { %v318_v25 = vpop.f32.mrf.mxu0  ;;  %v389_v26 = vpop.f32.mrf.mxu1 }
  0xf5   : > { %v396_v27 = vadd.f32 %v318_v25, %v316_v23  ;;  %v405_v28 = vmul.f32 %v316_v23, %v316_v23  ;;  %v406_v29 = vmul.f32 %v318_v25, %v318_v25  ;;  %v407_v30 = vmul.f32 %v387_v24, %v387_v24  ;;  %v395_v37 = vld [vmem:[#allocation2] sm:$0xff]  ;;  %v404_v40 = vld [vmem:[#allocation3] sm:$0xff] }
  0xf6   : > { %v408_v32 = vmul.f32 %v389_v26, %v389_v26  ;;  %vm402_vm2 = vcmask 7168  }
  0xf7   : > { %v397_v31 = vadd.f32 %v396_v27, %v387_v24  ;;  %v409_v33 = vadd.f32 %v406_v29, %v405_v28 }
  0xf9   : > { %v398_v34 = vadd.f32 %v397_v31, %v389_v26  ;;  %v410_v35 = vadd.f32 %v409_v33, %v407_v30 }
  0xfb   : > { %399 = vadd.xlane.f32.xlu0 %v398_v34  ;;  %v411_v36 = vadd.f32 %v410_v35, %v408_v32 }
  0xff   : > { %412 = vadd.xlane.f32.xlu0 %v411_v36 }
 0x184   : > { %v400_v38 = vpop.xlane.xlu0 %399 }
 0x185   : > { %v401_v39 = vadd.f32 %v400_v38, %v395_v37 }
 0x187   : > { %403 = vst.msk [vmem:[#allocation2] sm:$0xff] %vm402_vm2, %v401_v39 }
 0x188   : > { %v413_v41 = vpop.xlane.xlu0 %412 }
 0x189   : > { %v414_v42 = vadd.f32 %v413_v41, %v404_v40 }
 0x18b   : > { %415 = vst.msk [vmem:[#allocation3] sm:$0xff] %vm402_vm2, %v414_v42 }
 0x18c PF: > { %p554_p3 = scmp.ne.s32.totalorder %s687_s15, 1 }
 0x18e   : > { %419 = sbr.rel (%p554_p3) target bundleno = 562 (0x232), region = 52 }
 0x193   : > { %v420_v43 = vld [vmem:[#allocation2] sm:$0xff]  ;;  %v422_v44 = vld [vmem:[#allocation3] sm:$0xff]  ;;  %v702_v45 = vmov 0  }
 0x194   : > { %612 = vset.pattern.permute.xlu0 %v702_v45  ;;  %v421_v46 = vmul.f32 0.001953125, %v420_v43  ;;  %v423_v47 = vmul.f32 0.001953125, %v422_v44  ;;  %v428_v51 = vld [vmem:[%s813_s2] sm:$0xff] }
 0x195   : > { %v430_v54 = vld [vmem:[%s814_s3] sm:$0xff] }
 0x196   : > { %v424_v48 = vmul.f32 %v421_v46, %v421_v46 }
 0x198   : > { %v425_v49 = vsub.f32 %v423_v47, %v424_v48 }
 0x19a   : > { %v426_v50 = vadd.f32 1e-05, %v425_v49 }
 0x19c   : > { %613 = vrsqrt.f32 %v426_v50 }
 0x1a9   : > { %v614_v52 = vpop.eup %613 }
 0x1aa   : > { %v429_v53 = vmul.f32 %v614_v52, %v428_v51 }
 0x1ac   : > { %435 = vperm.xlu0 %612, %v429_v53   ;;  %v431_v55 = vmul.f32 %v429_v53, %v421_v46 }
 0x1ae   : > { %v432_v56 = vsub.f32 %v430_v54, %v431_v55 }
 0x1b0   : > { %444 = vperm.xlu0 %612, %v432_v56  }
 0x227   : > { %v436_v57 = vpop.permute.xlu0 %435 }
 0x228   : > { %v438_v58 = vmul.f32 %v436_v57, %v316_v23  ;;  %v439_v59 = vmul.f32 %v436_v57, %v318_v25  ;;  %v440_v60 = vmul.f32 %v436_v57, %v387_v24  ;;  %v441_v61 = vmul.f32 %v436_v57, %v389_v26 }
 0x22b   : > { %v445_v62 = vpop.permute.xlu0 %444 }
 0x22c   : > { %v447_v63 = vadd.f32 %v445_v62, %v438_v58  ;;  %v448_v0 = vadd.f32 %v445_v62, %v439_v59  ;;  %v449_v1 = vadd.f32 %v445_v62, %v440_v60  ;;  %v450_v2 = vadd.f32 %v445_v62, %v441_v61 }
 0x22e   : > { %v451_v3 = vmax.f32 %v447_v63, 0.0  ;;  %v452_v4 = vmax.f32 %v448_v0, 0.0  ;;  %v453_v5 = vmax.f32 %v449_v1, 0.0  ;;  %v454_v6 = vmax.f32 %v450_v2, 0.0 }
 0x230   : > { %455 = vst [vmem:[#allocation7] sm:$0xff] %v451_v3  ;;  %456 = vst [vmem:[#allocation7 + $0x8] sm:$0xff] %v452_v4 }
 0x231   : > { %457 = vst [vmem:[#allocation7 + $0x10] sm:$0xff] %v453_v5  ;;  %458 = vst [vmem:[#allocation7 + $0x18] sm:$0xff] %v454_v6 }
 0x232 PF: > { %p788_p4 = scmp.eq.s32.totalorder %s544_s18, 1  ;;  %s703_s11 = smov [#allocation7]  }
 0x233   : > { %s475_s12 = sshll.u32 %s703_s11, 4  ;;  %s476_s12 = int_to_ptr.vmem [resolvable:$true] %s475_s12 }
 0x234   : > { %s641_s13 = scalar_lea.vmem %s476_s12, 512  ;;  %s647_s14 = scalar_lea.vmem %s476_s12, 1024 }
 0x235   : > { %p642_p5 = scmp.ne.s32.totalorder %s476_s12, %s641_s13  ;;  %p648_p8 = scmp.lt.s32.totalorder %s476_s12, %s476_s12 }
 0x236   : > { %p649_p9 = scmp.lt.s32.totalorder %s647_s14, %s641_s13 }
 0x237   : > { %p643_p6 = pnand %p642_p5, %p788_p4 }
 0x238   : > { %p650_p10 = por %p649_p9, %p648_p8 }
 0x239   : > { %p644_p7 = pneg %p643_p6 }
 0x23b   : > { %p651_p11 = pnand %p650_p10, %p644_p7 }
 0x23d   : > { %654 = shalt.err (!%p651_p11)
}
 0x23e   : > { %565 = dma.vmem_to_hbm [thread:$0]  (%p788_p4), %s476_s12, 512, %s815_s4, [#allocation6]  }
 0x23f PF: > { %p579_p12 = scmp.ge.s32.totalorder %s695_s17, 2  ;;  %p580_p13 = scmp.eq.s32.totalorder %s545_s19, 1 }
 0x241   : > { %p573_p0 = pnand %p580_p13, %p579_p12 }
 0x243   : > { %p574_p1 = pneg %p573_p0 }
 0x245   : > { %682 = dma.done.wait (%p574_p1), [#allocation6], 512  }
 0x246   : > { %684 = vsyncadd (%p574_p1), [#allocation6], 4294966784  ;;  %s18_s17 = sadd.s32 1, %s695_s17   ;;  %s819_s15 = smov %s691_s16 }
 0x247   : > { %p15_p2 = scmp.ge.s32.totalorder %s18_s17, 4   ;;  %s820_s16 = smov %s822_s20 }
 0x249   :  { %17 = sbr.rel (!%p15_p2) target bundleno = 4 (0x4), region = 86 }
 0x24e   :  { %493 = vsyncpa [#allocation5], 1 }
 0x24f   :  { %495 = vsyncpa [#allocation5 + $0x1], 1 }
 0x250   :  { %496 = vsyncpa [#allocation6], 1 }
 0x251   :  { %498 = vsyncpa [#allocation6 + $0x1], 1 }

</bundles_post_ra>
